<compile_context>
chip_gen: v5e
topology: v5e:2x2
jax: 0.10.0
libtpu: 0.0.40
codegen_flags: <defaults>
</compile_context>

<pallas_src>
import functools

import jax
import jax.numpy as jnp
from jax.experimental import pallas as pl
from jax.experimental.pallas import tpu as pltpu


def _diff_loss_kernel(d1_ref, d2_ref, out_ref, gram_acc, sq1_acc, sq2_acc,
                      *, f_total, tk, inv_bb):
    k = pl.program_id(0)
    nk = pl.num_programs(0)

    @pl.when(k == 0)
    def _init():
        gram_acc[...] = jnp.zeros_like(gram_acc)
        sq1_acc[...] = jnp.zeros_like(sq1_acc)
        sq2_acc[...] = jnp.zeros_like(sq2_acc)

    d1 = d1_ref[...]          # (B, tk), native dtype (f32 or bf16)
    d2 = d2_ref[...]

    if f_total % tk != 0:
        # Ragged final tile: data past F in the block is undefined -> mask it.
        col = jax.lax.broadcasted_iota(jnp.int32, d1.shape, 1) + k * tk
        valid = col < f_total
        d1 = jnp.where(valid, d1, jnp.zeros_like(d1))
        d2 = jnp.where(valid, d2, jnp.zeros_like(d2))

    # Per-row sum of squares, accumulated in f32.
    d1f = d1.astype(jnp.float32)
    d2f = d2.astype(jnp.float32)
    sq1_acc[...] += jnp.sum(d1f * d1f, axis=1, keepdims=True)
    sq2_acc[...] += jnp.sum(d2f * d2f, axis=1, keepdims=True)

    # Raw Gram partial: contract the lane (feature) axis of both tiles on the
    # MXU -> (B, B), f32 accumulation; no explicit .T of a (B, tk) operand.
    gram_acc[...] += jax.lax.dot_general(
        d1, d2,
        dimension_numbers=(((1,), (1,)), ((), ())),
        preferred_element_type=jnp.float32)

    @pl.when(k == nk - 1)
    def _finalize():
        inv_n1 = pl.reciprocal(jnp.sqrt(sq1_acc[...]) + 1e-6)   # (B, 1)
        inv_n2 = pl.reciprocal(jnp.sqrt(sq2_acc[...]) + 1e-6)   # (B, 1)
        g = gram_acc[...]                                       # (B, B)
        g2 = g * g
        a2 = inv_n1 * inv_n1
        b2 = inv_n2 * inv_n2
        # sum_{ij} (g[i,j] * inv_n1[i] * inv_n2[j])^2 == a2^T @ (g2 @ b2);
        # written as a tiny matvec so no (B,1)->(1,B) transpose is needed.
        v = jnp.dot(g2, b2, preferred_element_type=jnp.float32)  # (B, 1)
        out_ref[0, 0] = jnp.sum(a2 * v) * inv_bb


def diff_loss(D1, D2, *, tk_target=4096):
    """Forward of fairlib DiffLoss. D1, D2: arrays with leading batch dim B.

    Returns a scalar f32. Inputs are flattened to (B, C*H*W) row-major, same
    as torch .view(B, -1), and passed in their native dtype.
    """
    B = D1.shape[0]
    assert D2.shape[0] == B
    d1 = D1.reshape(B, -1)
    d2 = D2.reshape(B, -1)
    F = d1.shape[1]
    assert d2.shape[1] == F, "mm requires matching flattened feature dims"

    if F <= tk_target:
        tk = F                    # single tile covers the whole feature axis
    else:
        tk = tk_target            # must be lane-aligned
        assert tk % 128 == 0
    grid_k = pl.cdiv(F, tk)

    kernel = functools.partial(
        _diff_loss_kernel, f_total=F, tk=tk, inv_bb=1.0 / (B * B))

    # TODO(synk): on v7x, split the F reduction across the two TensorCores
    # (core-parallel leading grid axis + per-core partial Gram/norm combine)
    # for ~2x HBM bandwidth; single-TC grid here works on all generations.
    out = pl.pallas_call(
        kernel,
        out_shape=jax.ShapeDtypeStruct((1, 1), jnp.float32),
        grid_spec=pltpu.PrefetchScalarGridSpec(
            num_scalar_prefetch=0,
            grid=(grid_k,),
            in_specs=[
                pl.BlockSpec((B, tk), lambda k: (0, k)),
                pl.BlockSpec((B, tk), lambda k: (0, k)),
            ],
            out_specs=pl.BlockSpec((1, 1), lambda k: (0, 0),
                                   memory_space=pltpu.MemorySpace.SMEM),
            scratch_shapes=[
                pltpu.VMEM((B, B), jnp.float32),   # Gram accumulator
                pltpu.VMEM((B, 1), jnp.float32),   # sum(D1^2) per row
                pltpu.VMEM((B, 1), jnp.float32),   # sum(D2^2) per row
            ]),
        compiler_params=pltpu.CompilerParams(
            dimension_semantics=("arbitrary",)),
    )(d1, d2)
    return out[0, 0]


def _diff_loss_ref(D1, D2):
    B = D1.shape[0]
    d1 = D1.reshape(B, -1).astype(jnp.float32)
    d2 = D2.reshape(B, -1).astype(jnp.float32)
    d1n = d1 / (jnp.linalg.norm(d1, axis=1, keepdims=True) + 1e-6)
    d2n = d2 / (jnp.linalg.norm(d2, axis=1, keepdims=True) + 1e-6)
    return jnp.mean((d1n @ d2n.T) ** 2)


if __name__ == "__main__":
    key = jax.random.PRNGKey(0)
    k1, k2, k3, k4 = jax.random.split(key, 4)

    # Case 1: f32 NCHW inputs, F = 4*16*16 = 1024 -> single-tile path.
    D1 = jax.random.normal(k1, (2, 4, 16, 16), dtype=jnp.float32)
    D2 = jax.random.normal(k2, (2, 4, 16, 16), dtype=jnp.float32)
    loss = diff_loss(D1, D2)
    jax.block_until_ready(loss)
    ref = _diff_loss_ref(D1, D2)
    assert jnp.allclose(loss, ref, rtol=1e-5, atol=1e-6), (loss, ref)

    # Case 2: bf16 inputs, F = 5*16*18 = 1440 with tk=512 -> 3 grid steps,
    # ragged final tile (exercises tiled reduction + lane mask + bf16 MXU).
    E1 = jax.random.normal(k3, (2, 5, 16, 18), dtype=jnp.float32).astype(jnp.bfloat16)
    E2 = jax.random.normal(k4, (2, 5, 16, 18), dtype=jnp.float32).astype(jnp.bfloat16)
    loss2 = diff_loss(E1, E2, tk_target=512)
    jax.block_until_ready(loss2)
    ref2 = _diff_loss_ref(E1, E2)
    assert jnp.allclose(loss2, ref2, rtol=1e-4, atol=1e-6), (loss2, ref2)

    print("KERNEL_OK")
</pallas_src>

<mosaic_0001>
module attributes {stable_mosaic.version = 11 : i64} {
  func.func @_diff_loss_kernel(%arg0: i32, %arg1: memref<2x1024xf32, #tpu.memory_space<vmem>>, %arg2: memref<2x1024xf32, #tpu.memory_space<vmem>>, %arg3: memref<1x1xf32, #tpu.memory_space<smem>>, %arg4: memref<2x2xf32, #tpu.memory_space<vmem>>, %arg5: memref<2x1xf32, #tpu.memory_space<vmem>>, %arg6: memref<2x1xf32, #tpu.memory_space<vmem>>) attributes {dimension_semantics = [#tpu.dimension_semantics<arbitrary>], iteration_bounds = array<i64: 1>, scalar_prefetch = 0 : i64, scratch_operands = 3 : i64, tpu.core_type = #tpu.core_type<tc>, window_params = [{transform_indices = @transform_0, window_bounds = array<i64: 2, 1024>}, {transform_indices = @transform_1, window_bounds = array<i64: 2, 1024>}, {transform_indices = @transform_2, window_bounds = array<i64: 1, 1>}]} {
    %c0_i32 = arith.constant 0 : i32
    %0 = arith.cmpi eq, %arg0, %c0_i32 : i32
    %1 = arith.extui %0 : i1 to i32
    %c0_i32_0 = arith.constant 0 : i32
    %2 = arith.cmpi ne, %1, %c0_i32_0 : i32
    scf.if %2 {
      %cst_20 = arith.constant 0.000000e+00 : f32
      %24 = vector.broadcast %cst_20 : f32 to vector<2x2xf32>
      %c0_21 = arith.constant 0 : index
      %c0_22 = arith.constant 0 : index
      %25 = vector.load %arg4[%c0_21, %c0_22] : memref<2x2xf32, #tpu.memory_space<vmem>>, vector<2x2xf32>
      tpu.vector_store %arg4[%c0_21, %c0_22], %24 {strides = array<i32>} : memref<2x2xf32, #tpu.memory_space<vmem>>, vector<2x2xf32>,
      %cst_23 = arith.constant 0.000000e+00 : f32
      %26 = vector.broadcast %cst_23 : f32 to vector<2x1xf32>
      %c0_24 = arith.constant 0 : index
      %c0_25 = arith.constant 0 : index
      %27 = vector.load %arg5[%c0_24, %c0_25] : memref<2x1xf32, #tpu.memory_space<vmem>>, vector<2x1xf32>
      tpu.vector_store %arg5[%c0_24, %c0_25], %26 {strides = array<i32>} : memref<2x1xf32, #tpu.memory_space<vmem>>, vector<2x1xf32>,
      %cst_26 = arith.constant 0.000000e+00 : f32
      %28 = vector.broadcast %cst_26 : f32 to vector<2x1xf32>
      %c0_27 = arith.constant 0 : index
      %c0_28 = arith.constant 0 : index
      %29 = vector.load %arg6[%c0_27, %c0_28] : memref<2x1xf32, #tpu.memory_space<vmem>>, vector<2x1xf32>
      tpu.vector_store %arg6[%c0_27, %c0_28], %28 {strides = array<i32>} : memref<2x1xf32, #tpu.memory_space<vmem>>, vector<2x1xf32>,
    } else {
    }
    %c0 = arith.constant 0 : index
    %c0_1 = arith.constant 0 : index
    %3 = vector.load %arg1[%c0, %c0_1] : memref<2x1024xf32, #tpu.memory_space<vmem>>, vector<2x1024xf32>
    %c0_2 = arith.constant 0 : index
    %c0_3 = arith.constant 0 : index
    %4 = vector.load %arg2[%c0_2, %c0_3] : memref<2x1024xf32, #tpu.memory_space<vmem>>, vector<2x1024xf32>
    %c0_4 = arith.constant 0 : index
    %c0_5 = arith.constant 0 : index
    %5 = vector.load %arg5[%c0_4, %c0_5] : memref<2x1xf32, #tpu.memory_space<vmem>>, vector<2x1xf32>
    %6 = arith.mulf %3, %3 : vector<2x1024xf32>
    %cst = arith.constant dense<0.000000e+00> : vector<2xf32>
    %7 = vector.multi_reduction <add>, %6, %cst [1] : vector<2x1024xf32> to vector<2xf32>
    %8 = vector.shape_cast %7 : vector<2xf32> to vector<2x1xf32>
    %9 = arith.addf %5, %8 : vector<2x1xf32>
    %c0_6 = arith.constant 0 : index
    %c0_7 = arith.constant 0 : index
    %10 = vector.load %arg5[%c0_6, %c0_7] : memref<2x1xf32, #tpu.memory_space<vmem>>, vector<2x1xf32>
    tpu.vector_store %arg5[%c0_6, %c0_7], %9 {strides = array<i32>} : memref<2x1xf32, #tpu.memory_space<vmem>>, vector<2x1xf32>,
    %c0_8 = arith.constant 0 : index
    %c0_9 = arith.constant 0 : index
    %11 = vector.load %arg6[%c0_8, %c0_9] : memref<2x1xf32, #tpu.memory_space<vmem>>, vector<2x1xf32>
    %12 = arith.mulf %4, %4 : vector<2x1024xf32>
    %cst_10 = arith.constant dense<0.000000e+00> : vector<2xf32>
    %13 = vector.multi_reduction <add>, %12, %cst_10 [1] : vector<2x1024xf32> to vector<2xf32>
    %14 = vector.shape_cast %13 : vector<2xf32> to vector<2x1xf32>
    %15 = arith.addf %11, %14 : vector<2x1xf32>
    %c0_11 = arith.constant 0 : index
    %c0_12 = arith.constant 0 : index
    %16 = vector.load %arg6[%c0_11, %c0_12] : memref<2x1xf32, #tpu.memory_space<vmem>>, vector<2x1xf32>
    tpu.vector_store %arg6[%c0_11, %c0_12], %15 {strides = array<i32>} : memref<2x1xf32, #tpu.memory_space<vmem>>, vector<2x1xf32>,
    %c0_13 = arith.constant 0 : index
    %c0_14 = arith.constant 0 : index
    %17 = vector.load %arg4[%c0_13, %c0_14] : memref<2x2xf32, #tpu.memory_space<vmem>>, vector<2x2xf32>
    %cst_15 = arith.constant dense<0.000000e+00> : vector<2x2xf32>
    %18 = tpu.matmul %3, %4, %cst_15 {dimension_numbers = #tpu.dot_dimension_numbers<[1], [1], [0], [0], [0, 0, 1, 0], [], []>} : vector<2x1024xf32>, vector<2x1024xf32>, vector<2x2xf32> -> vector<2x2xf32>
    %19 = arith.addf %17, %18 : vector<2x2xf32>
    %c0_16 = arith.constant 0 : index
    %c0_17 = arith.constant 0 : index
    %20 = vector.load %arg4[%c0_16, %c0_17] : memref<2x2xf32, #tpu.memory_space<vmem>>, vector<2x2xf32>
    tpu.vector_store %arg4[%c0_16, %c0_17], %19 {strides = array<i32>} : memref<2x2xf32, #tpu.memory_space<vmem>>, vector<2x2xf32>,
    %c0_i32_18 = arith.constant 0 : i32
    %21 = arith.cmpi eq, %arg0, %c0_i32_18 : i32
    %22 = arith.extui %21 : i1 to i32
    %c0_i32_19 = arith.constant 0 : i32
    %23 = arith.cmpi ne, %22, %c0_i32_19 : i32
    scf.if %23 {
      %c0_20 = arith.constant 0 : index
      %c0_21 = arith.constant 0 : index
      %24 = vector.load %arg5[%c0_20, %c0_21] : memref<2x1xf32, #tpu.memory_space<vmem>>, vector<2x1xf32>
      %25 = math.sqrt %24 : vector<2x1xf32>
      %cst_22 = arith.constant 9.99999997E-7 : f32
      %26 = vector.broadcast %cst_22 : f32 to vector<2x1xf32>
      %27 = arith.addf %25, %26 : vector<2x1xf32>
      %28 = tpu.reciprocal %27 : vector<2x1xf32> -> vector<2x1xf32>
      %c0_23 = arith.constant 0 : index
      %c0_24 = arith.constant 0 : index
      %29 = vector.load %arg6[%c0_23, %c0_24] : memref<2x1xf32, #tpu.memory_space<vmem>>, vector<2x1xf32>
      %30 = math.sqrt %29 : vector<2x1xf32>
      %cst_25 = arith.constant 9.99999997E-7 : f32
      %31 = vector.broadcast %cst_25 : f32 to vector<2x1xf32>
      %32 = arith.addf %30, %31 : vector<2x1xf32>
      %33 = tpu.reciprocal %32 : vector<2x1xf32> -> vector<2x1xf32>
      %c0_26 = arith.constant 0 : index
      %c0_27 = arith.constant 0 : index
      %34 = vector.load %arg4[%c0_26, %c0_27] : memref<2x2xf32, #tpu.memory_space<vmem>>, vector<2x2xf32>
      %35 = arith.mulf %34, %34 : vector<2x2xf32>
      %36 = arith.mulf %28, %28 : vector<2x1xf32>
      %37 = arith.mulf %33, %33 : vector<2x1xf32>
      %cst_28 = arith.constant dense<0.000000e+00> : vector<2x1xf32>
      %38 = tpu.matmul %35, %37, %cst_28 {dimension_numbers = #tpu.dot_dimension_numbers<[1], [0], [0], [1], [0, 0, 1, 1], [], []>} : vector<2x2xf32>, vector<2x1xf32>, vector<2x1xf32> -> vector<2x1xf32>
      %39 = arith.mulf %36, %38 : vector<2x1xf32>
      %40 = vector.shape_cast %39 : vector<2x1xf32> to vector<1x2x1xf32>
      %cst_29 = arith.constant dense<0.000000e+00> : vector<1xf32>
      %41 = vector.multi_reduction <add>, %40, %cst_29 [1, 2] : vector<1x2x1xf32> to vector<1xf32>
      %42 = vector.shape_cast %41 : vector<1xf32> to vector<1x1x1xf32>
      %43 = vector.extract %42[0, 0, 0] : f32 from vector<1x1x1xf32>
      %cst_30 = arith.constant 2.500000e-01 : f32
      %44 = arith.mulf %43, %cst_30 : f32
      %c0_31 = arith.constant 0 : index
      %c0_32 = arith.constant 0 : index
      %45 = memref.load %arg3[%c0_31, %c0_32] : memref<1x1xf32, #tpu.memory_space<smem>>
      memref.store %44, %arg3[%c0_31, %c0_32] : memref<1x1xf32, #tpu.memory_space<smem>>
    } else {
    }
    return
  }
  func.func @transform_0(%arg0: i32) -> (i32, i32) {
    %c0_i32 = arith.constant 0 : i32
    %c0_i32_0 = arith.constant 0 : i32
    return %c0_i32, %arg0 : i32, i32
  }
  func.func @transform_1(%arg0: i32) -> (i32, i32) {
    %c0_i32 = arith.constant 0 : i32
    %c0_i32_0 = arith.constant 0 : i32
    return %c0_i32, %arg0 : i32, i32
  }
  func.func @transform_2(%arg0: i32) -> (i32, i32) {
    %c0_i32 = arith.constant 0 : i32
    %c0_i32_0 = arith.constant 0 : i32
    %c0_i32_1 = arith.constant 0 : i32
    return %c0_i32, %c0_i32_0 : i32, i32
  }
}

</mosaic_0001>

<bundles_post_ra>
// kernel: tpu_custom_call.1
= control target key start
LH: loop header
LB: loop body
LE: loop exit
PB: predicated region body
PF: predicated region fallthrough
CT: control target
= control target key end

     0   :  { %7 = vsyncpa [#allocation6], 0  ;;  %s602_s0 = inlined_call_operand.hbm [shape: f32[2,1024], index: 0, kind: input, shape index: {}]   ;;  %s603_s1 = inlined_call_operand.hbm [shape: f32[2,1024], index: 1, kind: input, shape index: {}]   ;;  %s604_s2 = inlined_call_operand.hbm [shape: f32[1,1], index: 2, kind: output, shape index: {}]  }
   0x1   :  { %8 = vsyncpa [#allocation9], 0 }
   0x2   :  { %9 = vsyncpa [#allocation7], 0  ;;  %s15_s11 = sshll.u32 %s602_s0, 4  ;;  %s550_s12 = smov [#allocation5]   ;;  %s16_s11 = int_to_ptr.hbm [resolvable:$true] %s15_s11 }
   0x3   :  { %s17_s13 = sshll.u32 %s550_s12, 4  ;;  %s26_s16 = sshll.u32 %s603_s1, 4  ;;  %s18_s13 = int_to_ptr.vmem [resolvable:$true] %s17_s13  ;;  %s27_s16 = int_to_ptr.hbm [resolvable:$true] %s26_s16 }
   0x4   :  { %20 = dma.hbm_to_vmem [thread:$0]  %s16_s11, 256, %s18_s13, [#allocation6]  }
   0x5   :  { %s551_s17 = smov [#allocation8]  }
   0x6   :  { %s28_s18 = sshll.u32 %s551_s17, 4  ;;  %s29_s18 = int_to_ptr.vmem [resolvable:$true] %s28_s18 }
   0x7   :  { %31 = dma.hbm_to_vmem [thread:$0]  %s27_s16, 256, %s29_s18, [#allocation9]  }
   0x8   :  { %544 = dma.done.wait [#allocation6], 256  }
   0x9   :  { %545 = vsyncadd [#allocation6], 4294967040 }
   0xa   :  { %546 = dma.done.wait [#allocation9], 256  }
   0xb   :  { %547 = vsyncadd [#allocation9], 4294967040  ;;  %v49_v0 = vld [vmem:[#allocation5] sm:$0xff]  ;;  %v50_v1 = vld [vmem:[#allocation5 + $0x8] sm:$0xff]  ;;  %vm77_vm0 = vcmask 1041408   ;;  %vm46_vm1 = vcmask 1024  }
   0xc   :  { %v54_v2 = vmul.f32 %v49_v0, %v49_v0  ;;  %v55_v3 = vmul.f32 %v50_v1, %v50_v1  ;;  %v51_v4 = vld [vmem:[#allocation8] sm:$0xff]  ;;  %v52_v5 = vld [vmem:[#allocation8 + $0x8] sm:$0xff]  ;;  %v552_v43 = vmov 0.0   ;;  %vm44_vm2 = vcmask 9216   ;;  %s456_s19 = sshll.u32 %s604_s2, 4  ;;  %s553_s22 = smov [#allocation10]   ;;  %s457_s19 = int_to_ptr.hbm [resolvable:$true] %s456_s19 }
   0xd   :  { %v99_v8 = vmul.f32 %v51_v4, %v51_v4  ;;  %v100_v11 = vmul.f32 %v52_v5, %v52_v5  ;;  %48 = vst.msk [vmem:[#allocation4] sm:$0x3] %vm46_vm1, %v552_v43  ;;  %vm410_vm9 = vcmask 15360  }
   0xe   :  { %58 = vst [vmem:[#allocation1] ss:$4 sm:$0xff] %v54_v2 }
   0xf   :  { %60 = vst [vmem:[#allocation1 + $0x20] ss:$4 sm:$0xff] %v55_v3 }
  0x10   :  { %47 = vst.msk [vmem:[#allocation3] sm:$0x3] %vm46_vm1, %v552_v43 }
  0x11   :  { %45 = vst.msk [vmem:[#allocation2] sm:$0x3] %vm44_vm2, %v552_v43 }
  0x15   :  { %v61_v6 = vld.sshfl [vmem:[#allocation1] sm:$0xff pattern:$0x73625140]  ;;  %v62_v7 = vld.sshfl [vmem:[#allocation1 + $0x8] sm:$0xff pattern:$0x73625140] }
  0x16   :  { %v63_v9 = vld.sshfl [vmem:[#allocation1 + $0x10] sm:$0xff pattern:$0x73625140]  ;;  %v64_v10 = vld.sshfl [vmem:[#allocation1 + $0x18] sm:$0xff pattern:$0x73625140] }
  0x17   :  { %v65_v12 = vld.sshfl [vmem:[#allocation1 + $0x20] sm:$0xff pattern:$0x73625140]  ;;  %v66_v13 = vld.sshfl [vmem:[#allocation1 + $0x28] sm:$0xff pattern:$0x73625140] }
  0x18   :  { %v67_v14 = vld.sshfl [vmem:[#allocation1 + $0x30] sm:$0xff pattern:$0x73625140]  ;;  %v68_v15 = vld.sshfl [vmem:[#allocation1 + $0x38] sm:$0xff pattern:$0x73625140] }
  0x19   :  { %103 = vst [vmem:[#allocation1] ss:$4 sm:$0xff] %v99_v8  ;;  %v78_v29 = vsel %vm77_vm0, %v61_v6, 0.0  ;;  %v79_v30 = vsel %vm77_vm0, %v62_v7, 0.0  ;;  %v81_v31 = vsel %vm77_vm0, %v63_v9, 0.0  ;;  %v83_v35 = vsel %vm77_vm0, %v64_v10, 0.0 }
  0x1a   :  { %105 = vst [vmem:[#allocation1 + $0x20] ss:$4 sm:$0xff] %v100_v11  ;;  %v80_v33 = vadd.f32 %v79_v30, %v78_v29  ;;  %v85_v41 = vsel %vm77_vm0, %v65_v12, 0.0  ;;  %v87_v42 = vsel %vm77_vm0, %v66_v13, 0.0  ;;  %v89_v59 = vsel %vm77_vm0, %v67_v14, 0.0 }
  0x1b   :  { %v91_v61 = vsel %vm77_vm0, %v68_v15, 0.0  ;;  %v98_v7 = vld [vmem:[#allocation4] sm:$0x3] }
  0x1c   :  { %v82_v38 = vadd.f32 %v81_v31, %v80_v33 }
  0x1e   :  { %v84_v47 = vadd.f32 %v83_v35, %v82_v38 }
  0x20   :  { %v106_v16 = vld.sshfl [vmem:[#allocation1] sm:$0xff pattern:$0x73625140]  ;;  %v107_v17 = vld.sshfl [vmem:[#allocation1 + $0x8] sm:$0xff pattern:$0x73625140]  ;;  %v86_v53 = vadd.f32 %v85_v41, %v84_v47 }
  0x21   :  { %v108_v18 = vld.sshfl [vmem:[#allocation1 + $0x10] sm:$0xff pattern:$0x73625140]  ;;  %v109_v19 = vld.sshfl [vmem:[#allocation1 + $0x18] sm:$0xff pattern:$0x73625140] }
  0x22   :  { %v110_v20 = vld.sshfl [vmem:[#allocation1 + $0x20] sm:$0xff pattern:$0x73625140]  ;;  %v111_v21 = vld.sshfl [vmem:[#allocation1 + $0x28] sm:$0xff pattern:$0x73625140]  ;;  %v88_v58 = vadd.f32 %v87_v42, %v86_v53 }
  0x23   :  { %v112_v22 = vld.sshfl [vmem:[#allocation1 + $0x30] sm:$0xff pattern:$0x73625140]  ;;  %v113_v23 = vld.sshfl [vmem:[#allocation1 + $0x38] sm:$0xff pattern:$0x73625140] }
  0x24   :  { %v122_v24 = vsel %vm77_vm0, %v106_v16, 0.0  ;;  %v123_v25 = vsel %vm77_vm0, %v107_v17, 0.0  ;;  %v125_v26 = vsel %vm77_vm0, %v108_v18, 0.0  ;;  %144 = vst [vmem:[#allocation1] ss:$4 sm:$0xff] %v49_v0  ;;  %v127_v28 = vsel %vm77_vm0, %v109_v19, 0.0 }
  0x25   :  { %v124_v27 = vadd.f32 %v123_v25, %v122_v24  ;;  %146 = vst [vmem:[#allocation1 + $0x20] ss:$4 sm:$0xff] %v50_v1  ;;  %v129_v34 = vsel %vm77_vm0, %v110_v20, 0.0  ;;  %v131_v37 = vsel %vm77_vm0, %v111_v21, 0.0  ;;  %v133_v39 = vsel %vm77_vm0, %v112_v22, 0.0 }
  0x26   :  { %v135_v40 = vsel %vm77_vm0, %v113_v23, 0.0  ;;  %v90_v60 = vadd.f32 %v89_v59, %v88_v58  ;;  %v53_v19 = vld [vmem:[#allocation3] sm:$0x3] }
  0x27   :  { %v126_v32 = vadd.f32 %v125_v26, %v124_v27 }
  0x28   :  { %v92_v6 = vadd.f32 %v91_v61, %v90_v60 }
  0x29   :  { %v128_v36 = vadd.f32 %v127_v28, %v126_v32 }
  0x2b   :  { %v130_v44 = vadd.f32 %v129_v34, %v128_v36  ;;  %v147_v45 = vld.sshfl [vmem:[#allocation1] sm:$0xff pattern:$0x73625140]  ;;  %v148_v46 = vld.sshfl [vmem:[#allocation1 + $0x8] sm:$0xff pattern:$0x73625140] }
  0x2c   :  { %v149_v48 = vld.sshfl [vmem:[#allocation1 + $0x10] sm:$0xff pattern:$0x73625140]  ;;  %v150_v49 = vld.sshfl [vmem:[#allocation1 + $0x18] sm:$0xff pattern:$0x73625140] }
  0x2d   :  { %v132_v50 = vadd.f32 %v131_v37, %v130_v44  ;;  %v151_v51 = vld.sshfl [vmem:[#allocation1 + $0x20] sm:$0xff pattern:$0x73625140]  ;;  %v152_v52 = vld.sshfl [vmem:[#allocation1 + $0x28] sm:$0xff pattern:$0x73625140] }
  0x2e   :  { %v153_v54 = vld.sshfl [vmem:[#allocation1 + $0x30] sm:$0xff pattern:$0x73625140]  ;;  %v154_v55 = vld.sshfl [vmem:[#allocation1 + $0x38] sm:$0xff pattern:$0x73625140] }
  0x2f   :  { %v134_v56 = vadd.f32 %v133_v39, %v132_v50  ;;  %165 = vst [vmem:[#allocation1] ss:$4 sm:$0xff] %v51_v4  ;;  %v141_v39 = vld [vmem:[#allocation2] sm:$0x3] }
  0x30   :  { %167 = vst [vmem:[#allocation1 + $0x20] ss:$4 sm:$0xff] %v52_v5 }
  0x31   :  { %v136_v57 = vadd.f32 %v135_v40, %v134_v56 }
  0x33   :  { %137 = vadd.xlane.f32.xlu0 %v136_v57 }
  0x36   :  { %v170_v62 = vld.sshfl [vmem:[#allocation1 + $0x10] sm:$0xff pattern:$0x73625140]  ;;  %v168_v63 = vld.sshfl [vmem:[#allocation1] sm:$0xff pattern:$0x73625140] }
  0x37   :  { %239 = vmatpush.xpose.msra.mxu2 %v170_v62  ;;  %199 = vmatpush.xpose.msra.mxu0 %v168_v63  ;;  %v171_v0 = vld.sshfl [vmem:[#allocation1 + $0x18] sm:$0xff pattern:$0x73625140]  ;;  %v169_v1 = vld.sshfl [vmem:[#allocation1 + $0x8] sm:$0xff pattern:$0x73625140] }
  0x38   :  { %259 = vmatpush.xpose.msra.mxu3 %v171_v0  ;;  %219 = vmatpush.xpose.msra.mxu1 %v169_v1  ;;  %v174_v2 = vld.sshfl [vmem:[#allocation1 + $0x30] sm:$0xff pattern:$0x73625140]  ;;  %v172_v3 = vld.sshfl [vmem:[#allocation1 + $0x20] sm:$0xff pattern:$0x73625140] }
  0x39   :  { %v175_v4 = vld.sshfl [vmem:[#allocation1 + $0x38] sm:$0xff pattern:$0x73625140]  ;;  %v173_v5 = vld.sshfl [vmem:[#allocation1 + $0x28] sm:$0xff pattern:$0x73625140] }
  0x3a   :  { %240 = vmatmul.f32.vlgmr.msra.gmra.mxu2 %v149_v48  ;;  %200 = vmatmul.f32.vlgmr.msra.gmra.mxu0 %v147_v45 }
  0x3b   :  { %319 = vmatpush.xpose.msrb.mxu2 %v174_v2  ;;  %279 = vmatpush.xpose.msrb.mxu0 %v172_v3 }
  0x3c   :  { %260 = vmatmul.f32.vlgmr.msra.gmra.mxu3 %v150_v49  ;;  %220 = vmatmul.f32.vlgmr.msra.gmra.mxu1 %v148_v46 }
  0x3d   :  { %339 = vmatpush.xpose.msrb.mxu3 %v175_v4  ;;  %299 = vmatpush.xpose.msrb.mxu1 %v173_v5 }
  0x3e   :  { %93 = vadd.xlane.f32.xlu0 %v92_v6 }
  0x42   :  { %320 = vmatmul.f32.vlgmr.msrb.gmra.mxu2 %v153_v54  ;;  %280 = vmatmul.f32.vlgmr.msrb.gmra.mxu0 %v151_v51 }
  0x44   :  { %340 = vmatmul.f32.vlgmr.msrb.gmra.mxu3 %v154_v55  ;;  %300 = vmatmul.f32.vlgmr.msrb.gmra.mxu1 %v152_v52 }
  0xa6   :  { %v138_v8 = vpop.xlane.xlu0 %137 }
  0xa7   :  { %v139_v9 = vadd.f32 %v138_v8, %v98_v7 }
  0xa9   :  { %140 = vst.msk [vmem:[#allocation4] sm:$0x3] %vm46_vm1, %v139_v9 }
  0xb0   :  { %v378_v10 = vld [vmem:[#allocation4] sm:$0x3] }
  0xb1   :  { %476 = vrsqrt.f32 %v378_v10  ;;  %v94_v18 = vpop.xlane.xlu0 %93  ;;  %vm386_vm3 = vcmp.eq.f32.partialorder %v378_v10, inf  ;;  %v389_v31 = vand.u32 2147483648, %v378_v10  ;;  %vm388_vm4 = vcmp.eq.f32.partialorder %v378_v10, 0.0 }
  0xb2   :  { %v95_v21 = vadd.f32 %v94_v18, %v53_v19 }
  0xb4   :  { %97 = vst.msk [vmem:[#allocation3] sm:$0x3] %vm46_vm1, %v95_v21 }
  0xb7   :  { %v477_v11 = vpop.eup %476  ;;  %v201_v12 = vpop.f32.mrf.mxu0 }
  0xb8   :  { %v380_v14 = vmul.f32 %v477_v11, %v378_v10 }
  0xb9   :  { %v221_v13 = vpop.f32.mrf.mxu1 }
  0xba   :  { %v222_v15 = vadd.f32 %v221_v13, %v201_v12  ;;  %v381_v16 = vmul.f32 %v477_v11, %v380_v14 }
  0xbb   :  { %v350_v55 = vld [vmem:[#allocation3] sm:$0x3] }
  0xbc   :  { %v382_v17 = vmul.f32 0.5, %v381_v16  ;;  %vm358_vm10 = vcmp.eq.f32.partialorder %v350_v55, inf  ;;  %v361_v63 = vand.u32 2147483648, %v350_v55  ;;  %vm360_vm11 = vcmp.eq.f32.partialorder %v350_v55, 0.0 }
  0xbd   :  { %v241_v20 = vpop.f32.mrf.mxu2 }
  0xbe   :  { %v242_v22 = vadd.f32 %v241_v20, %v222_v15  ;;  %v383_v24 = vsub.f32 1.5, %v382_v17 }
  0xbf   :  { %v261_v23 = vpop.f32.mrf.mxu3  ;;  %v281_v25 = vpop.f32.mrf.mxu0 }
  0xc0   :  { %v262_v26 = vadd.f32 %v261_v23, %v242_v22  ;;  %v384_v27 = vmul.f32 %v477_v11, %v383_v24 }
  0xc1   :  { %v301_v28 = vpop.f32.mrf.mxu1 }
  0xc2   :  { %v282_v29 = vadd.f32 %v281_v25, %v262_v26  ;;  %v385_v30 = vmul.f32 %v384_v27, %v378_v10 }
  0xc4   :  { %v302_v32 = vadd.f32 %v301_v28, %v282_v29  ;;  %v387_v33 = vsel %vm386_vm3, %v378_v10, %v385_v30 }
  0xc5   :  { %v321_v34 = vpop.f32.mrf.mxu2  ;;  %v390_v35 = vsel %vm388_vm4, %v389_v31, %v387_v33 }
  0xc6   :  { %v322_v36 = vadd.f32 %v321_v34, %v302_v32  ;;  %v391_v38 = vadd.f32 1e-06, %v390_v35 }
  0xc7   :  { %v341_v37 = vpop.f32.mrf.mxu3 }
  0xc8   :  { %v342_v40 = vadd.f32 %v341_v37, %v322_v36  ;;  %478 = vrcp.f32 %v391_v38  ;;  %v403_v45 = vand.u32 2147483648, %v391_v38  ;;  %v401_v47 = vand.u32 2147483647, %v391_v38 }
  0xc9   :  { %vm397_vm6 = vweird.f32 %v391_v38  ;;  %480 = vrsqrt.f32 %v350_v55 }
  0xca   :  { %v344_v41 = vadd.f32 %v342_v40, %v141_v39  ;;  %v404_v49 = vor.u32 1.1754944e-38, %v403_v45  ;;  %vm402_vm8 = vcmp.eq.f32.partialorder %v401_v47, 8.507059e+37 }
  0xcc   :  { %346 = vst.msk [vmem:[#allocation2] sm:$0x3] %vm44_vm2, %v344_v41 }
  0xce   :  { %v479_v42 = vpop.eup %478 }
  0xcf   :  { %v393_v43 = vmul.f32 %v479_v42, %v391_v38  ;;  %vm398_vm5 = vweird.f32 %v479_v42  ;;  %v481_v56 = vpop.eup %480 }
  0xd0   :  { %vm399_vm7 = vmor %vm397_vm6, %vm398_vm5  ;;  %v352_v57 = vmul.f32 %v481_v56, %v350_v55 }
  0xd1   :  { %v394_v44 = vsub.f32 1.0, %v393_v43 }
  0xd2   :  { %v353_v58 = vmul.f32 %v481_v56, %v352_v57 }
  0xd3   :  { %v395_v46 = vmul.f32 %v479_v42, %v394_v44  ;;  %v406_v51 = vld [vmem:[#allocation2] sm:$0x3] }
  0xd4   :  { %v407_v54 = vmul.f32 %v406_v51, %v406_v51  ;;  %v354_v59 = vmul.f32 0.5, %v353_v58 }
  0xd5   :  { %v396_v48 = vadd.f32 %v479_v42, %v395_v46 }
  0xd6   :  { %v355_v60 = vsub.f32 1.5, %v354_v59 }
  0xd7   :  { %v400_v50 = vsel %vm399_vm7, %v479_v42, %v396_v48 }
  0xd8   :  { %v405_v52 = vsel %vm402_vm8, %v404_v49, %v400_v50  ;;  %v356_v61 = vmul.f32 %v481_v56, %v355_v60 }
  0xd9   :  { %v409_v53 = vmul.f32 %v405_v52, %v405_v52 }
  0xda   :  { %v357_v62 = vmul.f32 %v356_v61, %v350_v55 }
  0xdb   :  { %468 = vmatpush.msk.msra.mxu0 %vm77_vm0, %v409_v53 }
  0xdc   :  { %469 = vmatmul.msk.f32.vlgmr.msra.gmra.mxu0 %vm410_vm9, %v407_v54  ;;  %v359_v0 = vsel %vm358_vm10, %v350_v55, %v357_v62 }
  0xdd   :  { %v362_v1 = vsel %vm360_vm11, %v361_v63, %v359_v0 }
  0xde   :  { %v363_v2 = vadd.f32 1e-06, %v362_v1 }
  0xe0   :  { %482 = vrcp.f32 %v363_v2  ;;  %vm369_vm12 = vweird.f32 %v363_v2  ;;  %v375_v7 = vand.u32 2147483648, %v363_v2  ;;  %v373_v9 = vand.u32 2147483647, %v363_v2 }
  0xe2   :  { %v376_v10 = vor.u32 1.1754944e-38, %v375_v7  ;;  %vm374_vm15 = vcmp.eq.f32.partialorder %v373_v9, 8.507059e+37 }
  0xe6   :  { %v483_v3 = vpop.eup %482 }
  0xe7   :  { %v365_v4 = vmul.f32 %v483_v3, %v363_v2  ;;  %vm370_vm13 = vweird.f32 %v483_v3 }
  0xe8   :  { %vm371_vm14 = vmor %vm369_vm12, %vm370_vm13 }
  0xe9   :  { %v366_v5 = vsub.f32 1.0, %v365_v4 }
  0xeb   :  { %v367_v6 = vmul.f32 %v483_v3, %v366_v5 }
  0xed   :  { %v368_v8 = vadd.f32 %v483_v3, %v367_v6 }
  0xef   :  { %v372_v11 = vsel %vm371_vm14, %v483_v3, %v368_v8 }
  0xf0   :  { %v377_v12 = vsel %vm374_vm15, %v376_v10, %v372_v11 }
  0xf1   :  { %v408_v13 = vmul.f32 %v377_v12, %v377_v12 }
 0x159   :  { %v434_v14 = vpop.f32.mrf.mxu0 }
 0x15a   :  { %v437_v15 = vmul.f32 %v434_v14, %v408_v13 }
 0x15c   :  { %v438_v16 = vsel %vm46_vm1, %v437_v15, 0.0 }
 0x15d   :  { %439 = vadd.xlane.f32.xlu1 %v438_v16 }
 0x1d0   :  { %v440_v17 = vpop.xlane.xlu1 %439 }
 0x1d1   :  { %v441_v18 = vrot.slane %v440_v17, 4 }
 0x1d3   :  { %v442_v19 = vadd.f32 %v441_v18, %v440_v17 }
 0x1d5   :  { %v443_v20 = vrot.slane %v442_v19, 2 }
 0x1d7   :  { %v444_v21 = vadd.f32 %v443_v20, %v442_v19 }
 0x1d9   :  { %v445_v22 = vrot.slane %v444_v21, 1 }
 0x1db   :  { %v446_v23 = vadd.f32 %v445_v22, %v444_v21 }
 0x1dd   :  { %470 = vpush %v446_v23 }
 0x20e   :  { %s471_s20 = spop %470 }
 0x20f   :  { %s448_s21 = smul.f32 0.25, %s471_s20 }
 0x211   :  { %450 = sst [smem:[#allocation10]] %s448_s21 }
 0x212   :  { %459 = dma.smem_to_hbm %s553_s22, 16, %s457_s19, [#allocation7]  }
 0x213   :  { %548 = dma.done.wait [#allocation7], 16  }
 0x214   :  { %549 = vsyncadd [#allocation7], 4294967280 }
 0x215   :  { %464 = sfence }
 0x216   :  { %465 = vsyncpa [#allocation6], 1 }
 0x217   :  { %466 = vsyncpa [#allocation9], 1 }
 0x218   :  { %467 = vsyncpa [#allocation7], 1 }

</bundles_post_ra>
